<compile_context>
chip_gen: v5e
topology: v5e:2x2
jax: 0.10.0
libtpu: 0.0.40
codegen_flags: <defaults>
</compile_context>

<pallas_src>
import math

import jax
import jax.numpy as jnp
from jax import lax
from jax.experimental import pallas as pl
from jax.experimental.pallas import tpu as pltpu


# ---------------------------------------------------------------------------
# tiling helper
# ---------------------------------------------------------------------------
def _pick_tile(total, preferred):
    """Largest tile <= preferred that evenly divides `total`."""
    if total % preferred == 0:
        return preferred
    for t in (512, 256, 128, 64, 32, 16, 8):
        if t <= preferred and total % t == 0:
            return t
    return total


# ---------------------------------------------------------------------------
# Stage 1: pre-LN + fused QKV projection (grid over flattened row tiles)
# ---------------------------------------------------------------------------
def _ln_qkv_kernel(x_ref, g1_ref, b1_ref, wqkv_ref, q_ref, k_ref, v_ref):
    x = x_ref[...].astype(jnp.float32)                 # [TM, H]
    h = x.shape[-1]
    inv_h = 1.0 / h

    # single-pass layernorm (sum + sumsq)
    s = jnp.sum(x, axis=-1, keepdims=True)
    s2 = jnp.sum(x * x, axis=-1, keepdims=True)
    mu = s * inv_h
    var = s2 * inv_h - mu * mu
    xn = (x - mu) * lax.rsqrt(var + 1e-5) * g1_ref[...] + b1_ref[...]

    # one wide MXU matmul for Q, K, V (bf16 operands, f32 accumulation)
    qkv = jnp.dot(xn.astype(jnp.bfloat16), wqkv_ref[...],
                  preferred_element_type=jnp.float32)  # [TM, 3H]

    scale = 1.0 / math.sqrt(h)                         # fold 1/sqrt(H) into Q
    q_ref[...] = (qkv[:, :h] * scale).astype(q_ref.dtype)
    k_ref[...] = qkv[:, h:2 * h].astype(k_ref.dtype)
    v_ref[...] = qkv[:, 2 * h:].astype(v_ref.dtype)


# ---------------------------------------------------------------------------
# Stage 2: flash attention + O-proj + residual + pre-LN GELU MLP
# ---------------------------------------------------------------------------
def _flash_attn_mlp_kernel(x_ref, q_ref, k_ref, v_ref, mask_ref,
                           wo_ref, w1_ref, w2_ref, g2_ref, b2_ref,
                           h_ref, m_sc, l_sc, acc_sc):
    qi = pl.program_id(1)
    ki = pl.program_id(2)
    n_kv = pl.num_programs(2)
    tq = q_ref.shape[1]
    tk = k_ref.shape[1]
    hid = q_ref.shape[2]

    @pl.when(ki == 0)
    def _():
        m_sc[...] = jnp.full_like(m_sc, -1e30)
        l_sc[...] = jnp.zeros_like(l_sc)
        acc_sc[...] = jnp.zeros_like(acc_sc)

    # skip KV tiles entirely in the causal future of this query tile
    @pl.when(ki * tk <= qi * tq + (tq - 1))
    def _():
        q = q_ref[0]                                   # [TQ, H] bf16 (pre-scaled)
        k = k_ref[0]                                   # [TK, H] bf16
        # contract last axes -> no explicit k.T / XLU transpose
        scores = lax.dot_general(q, k, (((1,), (1,)), ((), ())),
                                 preferred_element_type=jnp.float32)  # [TQ, TK]

        row = qi * tq + lax.broadcasted_iota(jnp.int32, (tq, tk), 0)
        col = ki * tk + lax.broadcasted_iota(jnp.int32, (tq, tk), 1)
        allowed = jnp.logical_and(col <= row, mask_ref[0] > 0.0)
        scores = jnp.where(allowed, scores, jnp.float32(-1e9))

        m_prev = m_sc[...]
        m_new = jnp.maximum(m_prev, jnp.max(scores, axis=-1, keepdims=True))
        alpha = jnp.exp(m_prev - m_new)
        p = jnp.exp(scores - m_new)
        l_sc[...] = alpha * l_sc[...] + jnp.sum(p, axis=-1, keepdims=True)
        acc_sc[...] = alpha * acc_sc[...] + jnp.dot(
            p.astype(jnp.bfloat16), v_ref[0], preferred_element_type=jnp.float32)
        m_sc[...] = m_new

    @pl.when(ki == n_kv - 1)
    def _():
        inv_l = pl.reciprocal(l_sc[...], approx=True)  # EUP slot, effectively free
        attn = acc_sc[...] * inv_l                     # [TQ, H] f32
        o = jnp.dot(attn.astype(jnp.bfloat16), wo_ref[...],
                    preferred_element_type=jnp.float32)
        h1 = x_ref[0].astype(jnp.float32) + o          # residual

        inv_h = 1.0 / hid
        s = jnp.sum(h1, axis=-1, keepdims=True)
        s2 = jnp.sum(h1 * h1, axis=-1, keepdims=True)
        mu = s * inv_h
        var = s2 * inv_h - mu * mu
        hn = (h1 - mu) * lax.rsqrt(var + 1e-5) * g2_ref[...] + b2_ref[...]

        ff = jnp.dot(hn.astype(jnp.bfloat16), w1_ref[...],
                     preferred_element_type=jnp.float32)   # [TQ, F]
        # TODO(synk): PyTorch nn.GELU default is the exact erf form; tanh approx used.
        ff = jax.nn.gelu(ff, approximate=True)
        ff = jnp.dot(ff.astype(jnp.bfloat16), w2_ref[...],
                     preferred_element_type=jnp.float32)   # [TQ, H]
        h_ref[0] = (h1 + ff).astype(h_ref.dtype)


def _full_spec3(shape):
    return pl.BlockSpec(shape, lambda b, qi, ki: (0,) * len(shape))


# ---------------------------------------------------------------------------
# Block forward: two pallas_calls under one jit
# ---------------------------------------------------------------------------
@jax.jit
def block_forward(x, attention_mask, prepared):
    """x: [B, S, H] f32, attention_mask: [B, S] (1 attend / 0 pad).
    Returns (hidden [B,S,H] f32, k [B,S,H] bf16, v [B,S,H] bf16)."""
    B, S, H = x.shape
    F = prepared["w1"].shape[1]
    BS = B * S

    TM = _pick_tile(BS, 128)   # row tile for LN+QKV
    TQ = _pick_tile(S, 128)    # query tile
    TK = _pick_tile(S, 256)    # KV tile (256 keeps v7x's 64 MiB VMEM safe)

    # ---- stage 1 ----
    x2d = x.reshape(BS, H)
    row_spec = pl.BlockSpec((TM, H), lambda i: (i, 0))
    q2d, k2d, v2d = pl.pallas_call(
        _ln_qkv_kernel,
        out_shape=tuple(jax.ShapeDtypeStruct((BS, H), jnp.bfloat16)
                        for _ in range(3)),
        grid=(BS // TM,),
        in_specs=[
            row_spec,
            pl.BlockSpec((1, H), lambda i: (0, 0)),
            pl.BlockSpec((1, H), lambda i: (0, 0)),
            pl.BlockSpec((H, 3 * H), lambda i: (0, 0)),
        ],
        out_specs=(row_spec, row_spec, row_spec),
        compiler_params=pltpu.CompilerParams(
            dimension_semantics=("parallel",)),
    )(x2d, prepared["g1"], prepared["b1"], prepared["wqkv"])

    q = q2d.reshape(B, S, H)
    k = k2d.reshape(B, S, H)
    v = v2d.reshape(B, S, H)
    mask3 = attention_mask.astype(jnp.float32).reshape(B, 1, S)

    # ---- stage 2 ----
    q_spec = pl.BlockSpec((1, TQ, H), lambda b, qi, ki: (b, qi, 0))
    kv_spec = pl.BlockSpec((1, TK, H), lambda b, qi, ki: (b, ki, 0))
    mask_spec = pl.BlockSpec((1, 1, TK), lambda b, qi, ki: (b, 0, ki))

    # explicit scoped-VMEM budget from the resident-tile footprint (+ headroom)
    est = (2 * 2 * (H * H + 2 * H * F)                       # bf16 weights, x2 buffers
           + 2 * (TQ * H * (4 + 2 + 4) + 2 * TK * H * 2 + TK * 4)
           + TQ * (H + 2) * 4)                               # scratch accumulators
    vmem_limit = min(100 * 1024 * 1024, int(1.5 * est) + (8 << 20))

    hidden = pl.pallas_call(
        _flash_attn_mlp_kernel,
        out_shape=jax.ShapeDtypeStruct((B, S, H), x.dtype),
        grid=(B, S // TQ, S // TK),
        in_specs=[
            q_spec,                 # x (residual)
            q_spec,                 # q (bf16, pre-scaled)
            kv_spec,                # k
            kv_spec,                # v
            mask_spec,              # padding mask
            _full_spec3((H, H)),    # wo
            _full_spec3((H, F)),    # w1
            _full_spec3((F, H)),    # w2
            _full_spec3((1, H)),    # g2
            _full_spec3((1, H)),    # b2
        ],
        out_specs=q_spec,
        scratch_shapes=[
            pltpu.VMEM((TQ, 1), jnp.float32),   # running max
            pltpu.VMEM((TQ, 1), jnp.float32),   # running denom
            pltpu.VMEM((TQ, H), jnp.float32),   # running numerator
        ],
        compiler_params=pltpu.CompilerParams(
            dimension_semantics=("parallel", "parallel", "arbitrary"),
            vmem_limit_bytes=vmem_limit),
    )(x, q, k, v, mask3,
      prepared["wo"], prepared["w1"], prepared["w2"],
      prepared["g2"], prepared["b2"])

    return hidden, k, v


# ---------------------------------------------------------------------------
# PraxisExpert wrapper (orchestration only — matches the PyTorch control flow)
# ---------------------------------------------------------------------------
def prepare_block_params(params):
    """Fuse QKV weights and cast matmul weights to bf16 once, up front."""
    wqkv = jnp.concatenate([params["wq"], params["wk"], params["wv"]], axis=1)
    return {
        "wqkv": wqkv.astype(jnp.bfloat16),
        "wo": params["wo"].astype(jnp.bfloat16),
        "w1": params["w1"].astype(jnp.bfloat16),
        "w2": params["w2"].astype(jnp.bfloat16),
        "g1": params["g1"].astype(jnp.float32),
        "b1": params["b1"].astype(jnp.float32),
        "g2": params["g2"].astype(jnp.float32),
        "b2": params["b2"].astype(jnp.float32),
    }


class PraxisExpertPallas:
    __version__ = "0.1.0"

    def __init__(self, params, router=False, is_remote=False):
        self.is_remote = is_remote
        self.prepared = prepare_block_params(params)   # the "block"
        self.router = router                           # config.router_type is None
        # TODO(synk): mixture_of_depths router (ROUTER_REGISTRY) not modeled;
        # only the config.router_type=None path is implemented.

    def __call__(self, inputs, attention_mask, past_key_values,
                 current_state, current_depth, block_ids=None):
        if self.is_remote:
            return self._remote_forward(inputs, attention_mask)
        return self._local_forward(inputs, current_state, attention_mask,
                                   past_key_values, current_depth, block_ids)

    def _local_forward(self, inputs, current_state, attention_mask,
                       past_key_values, current_depth, block_ids=None):
        aux_losses = []
        hidden_states, k, v = block_forward(inputs, attention_mask, self.prepared)
        layer_kv = (k, v)                # updated key/value cache (bf16)
        state_update = current_state     # block does not modify state here
        aux_losses.append(0.0)           # block aux loss
        return hidden_states, layer_kv, state_update, sum(aux_losses)

    def _remote_forward(self, inputs, attention_mask):
        residual = inputs
        aux_losses = []
        # TODO(synk): the .to('cpu') device hop of the remote path is not modeled.
        hidden_states, _, _ = block_forward(inputs, attention_mask, self.prepared)
        hidden_states = hidden_states + residual
        return hidden_states, sum(aux_losses)


# ---------------------------------------------------------------------------
# Deterministic parameter init + smoke test
# ---------------------------------------------------------------------------
def init_params(key, hidden, ffn):
    ks = jax.random.split(key, 6)
    s = 0.02
    return {
        "wq": s * jax.random.normal(ks[0], (hidden, hidden), jnp.float32),
        "wk": s * jax.random.normal(ks[1], (hidden, hidden), jnp.float32),
        "wv": s * jax.random.normal(ks[2], (hidden, hidden), jnp.float32),
        "wo": s * jax.random.normal(ks[3], (hidden, hidden), jnp.float32),
        "w1": s * jax.random.normal(ks[4], (hidden, ffn), jnp.float32),
        "w2": s * jax.random.normal(ks[5], (ffn, hidden), jnp.float32),
        "g1": jnp.ones((1, hidden), jnp.float32),
        "b1": jnp.zeros((1, hidden), jnp.float32),
        "g2": jnp.ones((1, hidden), jnp.float32),
        "b2": jnp.zeros((1, hidden), jnp.float32),
    }


if __name__ == "__main__":
    B, S, H, F = 2, 8, 32, 64
    key = jax.random.PRNGKey(0)
    k_in, k_par = jax.random.split(key)

    inputs = jax.random.normal(k_in, (B, S, H), jnp.float32)
    attention_mask = jnp.ones((B, S), jnp.float32).at[1, S - 2:].set(0.0)
    params = init_params(k_par, H, F)

    expert = PraxisExpertPallas(params, router=False, is_remote=False)
    hidden, layer_kv, state_update, aux = expert(
        inputs, attention_mask, past_key_values=None,
        current_state=None, current_depth=0, block_ids=None)
    jax.block_until_ready(hidden)
    jax.block_until_ready(layer_kv)

    remote_expert = PraxisExpertPallas(params, router=False, is_remote=True)
    remote_hidden, remote_aux = remote_expert(
        inputs, attention_mask, None, None, 0, None)
    jax.block_until_ready(remote_hidden)

    assert hidden.shape == (B, S, H)
    assert layer_kv[0].shape == (B, S, H) and layer_kv[1].shape == (B, S, H)
    assert remote_hidden.shape == (B, S, H)
    assert bool(jnp.all(jnp.isfinite(hidden)))
    assert float(aux) == 0.0 and float(remote_aux) == 0.0
    print("KERNEL_OK")
</pallas_src>

<mosaic_0001>
module attributes {stable_mosaic.version = 11 : i64} {
  func.func @_ln_qkv_kernel(%arg0: i32, %arg1: memref<16x32xf32, #tpu.memory_space<vmem>>, %arg2: memref<1x32xf32, #tpu.memory_space<vmem>>, %arg3: memref<1x32xf32, #tpu.memory_space<vmem>>, %arg4: memref<32x96xbf16, #tpu.memory_space<vmem>>, %arg5: memref<16x32xbf16, #tpu.memory_space<vmem>>, %arg6: memref<16x32xbf16, #tpu.memory_space<vmem>>, %arg7: memref<16x32xbf16, #tpu.memory_space<vmem>>) attributes {dimension_semantics = [#tpu.dimension_semantics<parallel>], iteration_bounds = array<i64: 1>, scalar_prefetch = 0 : i64, scratch_operands = 0 : i64, tpu.core_type = #tpu.core_type<tc>, window_params = [{transform_indices = @transform_0, window_bounds = array<i64: 16, 32>}, {pipeline_mode = #tpu.pipeline_mode<synchronous>, transform_indices = @transform_1, window_bounds = array<i64: 1, 32>}, {pipeline_mode = #tpu.pipeline_mode<synchronous>, transform_indices = @transform_2, window_bounds = array<i64: 1, 32>}, {pipeline_mode = #tpu.pipeline_mode<synchronous>, transform_indices = @transform_3, window_bounds = array<i64: 32, 96>}, {transform_indices = @transform_4, window_bounds = array<i64: 16, 32>}, {transform_indices = @transform_5, window_bounds = array<i64: 16, 32>}, {transform_indices = @transform_6, window_bounds = array<i64: 16, 32>}]} {
    %c0 = arith.constant 0 : index
    %c0_0 = arith.constant 0 : index
    %0 = vector.load %arg1[%c0, %c0_0] : memref<16x32xf32, #tpu.memory_space<vmem>>, vector<16x32xf32>
    %cst = arith.constant dense<0.000000e+00> : vector<16xf32>
    %1 = vector.multi_reduction <add>, %0, %cst [1] : vector<16x32xf32> to vector<16xf32>
    %2 = vector.shape_cast %1 : vector<16xf32> to vector<16x1xf32>
    %3 = arith.mulf %0, %0 : vector<16x32xf32>
    %cst_1 = arith.constant dense<0.000000e+00> : vector<16xf32>
    %4 = vector.multi_reduction <add>, %3, %cst_1 [1] : vector<16x32xf32> to vector<16xf32>
    %5 = vector.shape_cast %4 : vector<16xf32> to vector<16x1xf32>
    %cst_2 = arith.constant 3.125000e-02 : f32
    %6 = vector.broadcast %cst_2 : f32 to vector<16x1xf32>
    %7 = arith.mulf %2, %6 : vector<16x1xf32>
    %cst_3 = arith.constant 3.125000e-02 : f32
    %8 = vector.broadcast %cst_3 : f32 to vector<16x1xf32>
    %9 = arith.mulf %5, %8 : vector<16x1xf32>
    %10 = arith.mulf %7, %7 : vector<16x1xf32>
    %11 = arith.subf %9, %10 : vector<16x1xf32>
    %12 = vector.broadcast %7 : vector<16x1xf32> to vector<16x32xf32>
    %13 = arith.subf %0, %12 : vector<16x32xf32>
    %cst_4 = arith.constant 9.99999974E-6 : f32
    %14 = vector.broadcast %cst_4 : f32 to vector<16x1xf32>
    %15 = arith.addf %11, %14 : vector<16x1xf32>
    %16 = math.rsqrt %15 : vector<16x1xf32>
    %17 = vector.broadcast %16 : vector<16x1xf32> to vector<16x32xf32>
    %18 = arith.mulf %13, %17 : vector<16x32xf32>
    %c0_5 = arith.constant 0 : index
    %c0_6 = arith.constant 0 : index
    %19 = vector.load %arg2[%c0_5, %c0_6] : memref<1x32xf32, #tpu.memory_space<vmem>>, vector<1x32xf32>
    %20 = vector.broadcast %19 : vector<1x32xf32> to vector<16x32xf32>
    %21 = arith.mulf %18, %20 : vector<16x32xf32>
    %c0_7 = arith.constant 0 : index
    %c0_8 = arith.constant 0 : index
    %22 = vector.load %arg3[%c0_7, %c0_8] : memref<1x32xf32, #tpu.memory_space<vmem>>, vector<1x32xf32>
    %23 = vector.broadcast %22 : vector<1x32xf32> to vector<16x32xf32>
    %24 = arith.addf %21, %23 : vector<16x32xf32>
    %25 = arith.truncf %24 : vector<16x32xf32> to vector<16x32xbf16>
    %c0_9 = arith.constant 0 : index
    %c0_10 = arith.constant 0 : index
    %26 = vector.load %arg4[%c0_9, %c0_10] : memref<32x96xbf16, #tpu.memory_space<vmem>>, vector<32x96xbf16>
    %cst_11 = arith.constant dense<0.000000e+00> : vector<16x96xf32>
    %27 = tpu.matmul %25, %26, %cst_11 {dimension_numbers = #tpu.dot_dimension_numbers<[1], [0], [0], [1], [0, 0, 1, 1], [], []>} : vector<16x32xbf16>, vector<32x96xbf16>, vector<16x96xf32> -> vector<16x96xf32>
    %28 = vector.extract_strided_slice %27 {offsets = [0, 0], sizes = [16, 32], strides = [1, 1]} : vector<16x96xf32> to vector<16x32xf32>
    %cst_12 = arith.constant 0.176776692 : f32
    %29 = vector.broadcast %cst_12 : f32 to vector<16x32xf32>
    %30 = arith.mulf %28, %29 : vector<16x32xf32>
    %31 = arith.truncf %30 : vector<16x32xf32> to vector<16x32xbf16>
    %c0_13 = arith.constant 0 : index
    %c0_14 = arith.constant 0 : index
    %32 = vector.load %arg5[%c0_13, %c0_14] : memref<16x32xbf16, #tpu.memory_space<vmem>>, vector<16x32xbf16>
    tpu.vector_store %arg5[%c0_13, %c0_14], %31 {strides = array<i32>} : memref<16x32xbf16, #tpu.memory_space<vmem>>, vector<16x32xbf16>,
    %33 = vector.extract_strided_slice %27 {offsets = [0, 32], sizes = [16, 32], strides = [1, 1]} : vector<16x96xf32> to vector<16x32xf32>
    %34 = arith.truncf %33 : vector<16x32xf32> to vector<16x32xbf16>
    %c0_15 = arith.constant 0 : index
    %c0_16 = arith.constant 0 : index
    %35 = vector.load %arg6[%c0_15, %c0_16] : memref<16x32xbf16, #tpu.memory_space<vmem>>, vector<16x32xbf16>
    tpu.vector_store %arg6[%c0_15, %c0_16], %34 {strides = array<i32>} : memref<16x32xbf16, #tpu.memory_space<vmem>>, vector<16x32xbf16>,
    %36 = vector.extract_strided_slice %27 {offsets = [0, 64], sizes = [16, 32], strides = [1, 1]} : vector<16x96xf32> to vector<16x32xf32>
    %37 = arith.truncf %36 : vector<16x32xf32> to vector<16x32xbf16>
    %c0_17 = arith.constant 0 : index
    %c0_18 = arith.constant 0 : index
    %38 = vector.load %arg7[%c0_17, %c0_18] : memref<16x32xbf16, #tpu.memory_space<vmem>>, vector<16x32xbf16>
    tpu.vector_store %arg7[%c0_17, %c0_18], %37 {strides = array<i32>} : memref<16x32xbf16, #tpu.memory_space<vmem>>, vector<16x32xbf16>,
    return
  }
  func.func @transform_0(%arg0: i32) -> (i32, i32) {
    %c0_i32 = arith.constant 0 : i32
    %c0_i32_0 = arith.constant 0 : i32
    return %arg0, %c0_i32 : i32, i32
  }
  func.func @transform_1(%arg0: i32) -> (i32, i32) {
    %c0_i32 = arith.constant 0 : i32
    %c0_i32_0 = arith.constant 0 : i32
    %c0_i32_1 = arith.constant 0 : i32
    return %c0_i32, %c0_i32_0 : i32, i32
  }
  func.func @transform_2(%arg0: i32) -> (i32, i32) {
    %c0_i32 = arith.constant 0 : i32
    %c0_i32_0 = arith.constant 0 : i32
    %c0_i32_1 = arith.constant 0 : i32
    return %c0_i32, %c0_i32_0 : i32, i32
  }
  func.func @transform_3(%arg0: i32) -> (i32, i32) {
    %c0_i32 = arith.constant 0 : i32
    %c0_i32_0 = arith.constant 0 : i32
    %c0_i32_1 = arith.constant 0 : i32
    return %c0_i32, %c0_i32_0 : i32, i32
  }
  func.func @transform_4(%arg0: i32) -> (i32, i32) {
    %c0_i32 = arith.constant 0 : i32
    %c0_i32_0 = arith.constant 0 : i32
    return %arg0, %c0_i32 : i32, i32
  }
  func.func @transform_5(%arg0: i32) -> (i32, i32) {
    %c0_i32 = arith.constant 0 : i32
    %c0_i32_0 = arith.constant 0 : i32
    return %arg0, %c0_i32 : i32, i32
  }
  func.func @transform_6(%arg0: i32) -> (i32, i32) {
    %c0_i32 = arith.constant 0 : i32
    %c0_i32_0 = arith.constant 0 : i32
    return %arg0, %c0_i32 : i32, i32
  }
}

module attributes {stable_mosaic.version = 11 : i64} {
  func.func @_flash_attn_mlp_kernel(%arg0: i32, %arg1: i32, %arg2: i32, %arg3: memref<1x8x32xf32, #tpu.memory_space<vmem>>, %arg4: memref<1x8x32xbf16, #tpu.memory_space<vmem>>, %arg5: memref<1x8x32xbf16, #tpu.memory_space<vmem>>, %arg6: memref<1x8x32xbf16, #tpu.memory_space<vmem>>, %arg7: memref<1x1x8xf32, #tpu.memory_space<vmem>>, %arg8: memref<32x32xbf16, #tpu.memory_space<vmem>>, %arg9: memref<32x64xbf16, #tpu.memory_space<vmem>>, %arg10: memref<64x32xbf16, #tpu.memory_space<vmem>>, %arg11: memref<1x32xf32, #tpu.memory_space<vmem>>, %arg12: memref<1x32xf32, #tpu.memory_space<vmem>>, %arg13: memref<1x8x32xf32, #tpu.memory_space<vmem>>, %arg14: memref<8x1xf32, #tpu.memory_space<vmem>>, %arg15: memref<8x1xf32, #tpu.memory_space<vmem>>, %arg16: memref<8x32xf32, #tpu.memory_space<vmem>>) attributes {dimension_semantics = [#tpu.dimension_semantics<parallel>, #tpu.dimension_semantics<parallel>, #tpu.dimension_semantics<arbitrary>], iteration_bounds = array<i64: 2, 1, 1>, scalar_prefetch = 0 : i64, scratch_operands = 3 : i64, tpu.core_type = #tpu.core_type<tc>, window_params = [{transform_indices = @transform_0, window_bounds = array<i64: 1, 8, 32>}, {transform_indices = @transform_1, window_bounds = array<i64: 1, 8, 32>}, {transform_indices = @transform_2, window_bounds = array<i64: 1, 8, 32>}, {transform_indices = @transform_3, window_bounds = array<i64: 1, 8, 32>}, {transform_indices = @transform_4, window_bounds = array<i64: 1, 1, 8>}, {pipeline_mode = #tpu.pipeline_mode<synchronous>, transform_indices = @transform_5, window_bounds = array<i64: 32, 32>}, {pipeline_mode = #tpu.pipeline_mode<synchronous>, transform_indices = @transform_6, window_bounds = array<i64: 32, 64>}, {pipeline_mode = #tpu.pipeline_mode<synchronous>, transform_indices = @transform_7, window_bounds = array<i64: 64, 32>}, {pipeline_mode = #tpu.pipeline_mode<synchronous>, transform_indices = @transform_8, window_bounds = array<i64: 1, 32>}, {pipeline_mode = #tpu.pipeline_mode<synchronous>, transform_indices = @transform_9, window_bounds = array<i64: 1, 32>}, {transform_indices = @transform_10, window_bounds = array<i64: 1, 8, 32>}]} {
    %c0_i32 = arith.constant 0 : i32
    %0 = arith.cmpi eq, %arg2, %c0_i32 : i32
    %1 = arith.extui %0 : i1 to i32
    %c0_i32_0 = arith.constant 0 : i32
    %2 = arith.cmpi ne, %1, %c0_i32_0 : i32
    scf.if %2 {
      %cst = arith.constant -1.000000e+30 : f32
      %12 = vector.broadcast %cst : f32 to vector<8x1xf32>
      %c0 = arith.constant 0 : index
      %c0_5 = arith.constant 0 : index
      %13 = vector.load %arg14[%c0, %c0_5] : memref<8x1xf32, #tpu.memory_space<vmem>>, vector<8x1xf32>
      tpu.vector_store %arg14[%c0, %c0_5], %12 {strides = array<i32>} : memref<8x1xf32, #tpu.memory_space<vmem>>, vector<8x1xf32>,
      %cst_6 = arith.constant 0.000000e+00 : f32
      %14 = vector.broadcast %cst_6 : f32 to vector<8x1xf32>
      %c0_7 = arith.constant 0 : index
      %c0_8 = arith.constant 0 : index
      %15 = vector.load %arg15[%c0_7, %c0_8] : memref<8x1xf32, #tpu.memory_space<vmem>>, vector<8x1xf32>
      tpu.vector_store %arg15[%c0_7, %c0_8], %14 {strides = array<i32>} : memref<8x1xf32, #tpu.memory_space<vmem>>, vector<8x1xf32>,
      %cst_9 = arith.constant 0.000000e+00 : f32
      %16 = vector.broadcast %cst_9 : f32 to vector<8x32xf32>
      %c0_10 = arith.constant 0 : index
      %c0_11 = arith.constant 0 : index
      %17 = vector.load %arg16[%c0_10, %c0_11] : memref<8x32xf32, #tpu.memory_space<vmem>>, vector<8x32xf32>
      tpu.vector_store %arg16[%c0_10, %c0_11], %16 {strides = array<i32>} : memref<8x32xf32, #tpu.memory_space<vmem>>, vector<8x32xf32>,
    } else {
    }
    %c8_i32 = arith.constant 8 : i32
    %3 = arith.muli %arg2, %c8_i32 : i32
    %c8_i32_1 = arith.constant 8 : i32
    %4 = arith.muli %arg1, %c8_i32_1 : i32
    %c7_i32 = arith.constant 7 : i32
    %5 = arith.addi %4, %c7_i32 : i32
    %6 = arith.cmpi sle, %3, %5 : i32
    %7 = arith.extui %6 : i1 to i32
    %c0_i32_2 = arith.constant 0 : i32
    %8 = arith.cmpi ne, %7, %c0_i32_2 : i32
    scf.if %8 {
      %c0 = arith.constant 0 : index
      %c0_5 = arith.constant 0 : index
      %c0_6 = arith.constant 0 : index
      %12 = vector.load %arg4[%c0, %c0_5, %c0_6] : memref<1x8x32xbf16, #tpu.memory_space<vmem>>, vector<1x8x32xbf16>
      %13 = vector.shape_cast %12 : vector<1x8x32xbf16> to vector<8x32xbf16>
      %c0_7 = arith.constant 0 : index
      %c0_8 = arith.constant 0 : index
      %c0_9 = arith.constant 0 : index
      %14 = vector.load %arg5[%c0_7, %c0_8, %c0_9] : memref<1x8x32xbf16, #tpu.memory_space<vmem>>, vector<1x8x32xbf16>
      %15 = vector.shape_cast %14 : vector<1x8x32xbf16> to vector<8x32xbf16>
      %cst = arith.constant dense<0.000000e+00> : vector<8x8xf32>
      %16 = tpu.matmul %13, %15, %cst {dimension_numbers = #tpu.dot_dimension_numbers<[1], [1], [0], [0], [0, 0, 1, 0], [], []>} : vector<8x32xbf16>, vector<8x32xbf16>, vector<8x8xf32> -> vector<8x8xf32>
      %c8_i32_10 = arith.constant 8 : i32
      %17 = arith.muli %arg1, %c8_i32_10 : i32
      %18 = tpu.iota {dimensions = array<i32: 0>} : vector<8x8xi32>
      %19 = vector.broadcast %17 : i32 to vector<8x8xi32>
      %20 = arith.addi %19, %18 : vector<8x8xi32>
      %c8_i32_11 = arith.constant 8 : i32
      %21 = arith.muli %arg2, %c8_i32_11 : i32
      %22 = tpu.iota {dimensions = array<i32: 1>} : vector<8x8xi32>
      %23 = vector.broadcast %21 : i32 to vector<8x8xi32>
      %24 = arith.addi %23, %22 : vector<8x8xi32>
      %25 = arith.cmpi sle, %24, %20 : vector<8x8xi32>
      %c0_12 = arith.constant 0 : index
      %c0_13 = arith.constant 0 : index
      %c0_14 = arith.constant 0 : index
      %26 = vector.load %arg7[%c0_12, %c0_13, %c0_14] : memref<1x1x8xf32, #tpu.memory_space<vmem>>, vector<1x1x8xf32>
      %27 = vector.shape_cast %26 : vector<1x1x8xf32> to vector<1x8xf32>
      %cst_15 = arith.constant 0.000000e+00 : f32
      %28 = vector.broadcast %cst_15 : f32 to vector<1x8xf32>
      %29 = arith.cmpf ogt, %27, %28 : vector<1x8xf32>
      %30 = vector.broadcast %29 : vector<1x8xi1> to vector<8x8xi1>
      %31 = arith.andi %25, %30 : vector<8x8xi1>
      %cst_16 = arith.constant -1.000000e+09 : f32
      %32 = vector.broadcast %cst_16 : f32 to vector<8x8xf32>
      %33 = arith.select %31, %16, %32 : vector<8x8xi1>, vector<8x8xf32>
      %c0_17 = arith.constant 0 : index
      %c0_18 = arith.constant 0 : index
      %34 = vector.load %arg14[%c0_17, %c0_18] : memref<8x1xf32, #tpu.memory_space<vmem>>, vector<8x1xf32>
      %cst_19 = arith.constant dense<0xFF800000> : vector<8xf32>
      %35 = vector.multi_reduction <maximumf>, %33, %cst_19 [1] : vector<8x8xf32> to vector<8xf32>
      %36 = vector.shape_cast %35 : vector<8xf32> to vector<8x1xf32>
      %37 = arith.maximumf %34, %36 : vector<8x1xf32>
      %38 = arith.subf %34, %37 : vector<8x1xf32>
      %39 = math.exp %38 : vector<8x1xf32>
      %40 = vector.broadcast %37 : vector<8x1xf32> to vector<8x8xf32>
      %41 = arith.subf %33, %40 : vector<8x8xf32>
      %42 = math.exp %41 : vector<8x8xf32>
      %c0_20 = arith.constant 0 : index
      %c0_21 = arith.constant 0 : index
      %43 = vector.load %arg15[%c0_20, %c0_21] : memref<8x1xf32, #tpu.memory_space<vmem>>, vector<8x1xf32>
      %44 = arith.mulf %39, %43 : vector<8x1xf32>
      %cst_22 = arith.constant dense<0.000000e+00> : vector<8xf32>
      %45 = vector.multi_reduction <add>, %42, %cst_22 [1] : vector<8x8xf32> to vector<8xf32>
      %46 = vector.shape_cast %45 : vector<8xf32> to vector<8x1xf32>
      %47 = arith.addf %44, %46 : vector<8x1xf32>
      %c0_23 = arith.constant 0 : index
      %c0_24 = arith.constant 0 : index
      %48 = vector.load %arg15[%c0_23, %c0_24] : memref<8x1xf32, #tpu.memory_space<vmem>>, vector<8x1xf32>
      tpu.vector_store %arg15[%c0_23, %c0_24], %47 {strides = array<i32>} : memref<8x1xf32, #tpu.memory_space<vmem>>, vector<8x1xf32>,
      %c0_25 = arith.constant 0 : index
      %c0_26 = arith.constant 0 : index
      %49 = vector.load %arg16[%c0_25, %c0_26] : memref<8x32xf32, #tpu.memory_space<vmem>>, vector<8x32xf32>
      %50 = vector.broadcast %39 : vector<8x1xf32> to vector<8x32xf32>
      %51 = arith.mulf %50, %49 : vector<8x32xf32>
      %52 = arith.truncf %42 : vector<8x8xf32> to vector<8x8xbf16>
      %c0_27 = arith.constant 0 : index
      %c0_28 = arith.constant 0 : index
      %c0_29 = arith.constant 0 : index
      %53 = vector.load %arg6[%c0_27, %c0_28, %c0_29] : memref<1x8x32xbf16, #tpu.memory_space<vmem>>, vector<1x8x32xbf16>
      %54 = vector.shape_cast %53 : vector<1x8x32xbf16> to vector<8x32xbf16>
      %cst_30 = arith.constant dense<0.000000e+00> : vector<8x32xf32>
      %55 = tpu.matmul %52, %54, %cst_30 {dimension_numbers = #tpu.dot_dimension_numbers<[1], [0], [0], [1], [0, 0, 1, 1], [], []>} : vector<8x8xbf16>, vector<8x32xbf16>, vector<8x32xf32> -> vector<8x32xf32>
      %56 = arith.addf %51, %55 : vector<8x32xf32>
      %c0_31 = arith.constant 0 : index
      %c0_32 = arith.constant 0 : index
      %57 = vector.load %arg16[%c0_31, %c0_32] : memref<8x32xf32, #tpu.memory_space<vmem>>, vector<8x32xf32>
      tpu.vector_store %arg16[%c0_31, %c0_32], %56 {strides = array<i32>} : memref<8x32xf32, #tpu.memory_space<vmem>>, vector<8x32xf32>,
      %c0_33 = arith.constant 0 : index
      %c0_34 = arith.constant 0 : index
      %58 = vector.load %arg14[%c0_33, %c0_34] : memref<8x1xf32, #tpu.memory_space<vmem>>, vector<8x1xf32>
      tpu.vector_store %arg14[%c0_33, %c0_34], %37 {strides = array<i32>} : memref<8x1xf32, #tpu.memory_space<vmem>>, vector<8x1xf32>,
    } else {
    }
    %c0_i32_3 = arith.constant 0 : i32
    %9 = arith.cmpi eq, %arg2, %c0_i32_3 : i32
    %10 = arith.extui %9 : i1 to i32
    %c0_i32_4 = arith.constant 0 : i32
    %11 = arith.cmpi ne, %10, %c0_i32_4 : i32
    scf.if %11 {
      %c0 = arith.constant 0 : index
      %c0_5 = arith.constant 0 : index
      %12 = vector.load %arg15[%c0, %c0_5] : memref<8x1xf32, #tpu.memory_space<vmem>>, vector<8x1xf32>
      %13 = tpu.reciprocal %12 {approx = true} : vector<8x1xf32> -> vector<8x1xf32>
      %c0_6 = arith.constant 0 : index
      %c0_7 = arith.constant 0 : index
      %14 = vector.load %arg16[%c0_6, %c0_7] : memref<8x32xf32, #tpu.memory_space<vmem>>, vector<8x32xf32>
      %15 = vector.broadcast %13 : vector<8x1xf32> to vector<8x32xf32>
      %16 = arith.mulf %14, %15 : vector<8x32xf32>
      %17 = arith.truncf %16 : vector<8x32xf32> to vector<8x32xbf16>
      %c0_8 = arith.constant 0 : index
      %c0_9 = arith.constant 0 : index
      %18 = vector.load %arg8[%c0_8, %c0_9] : memref<32x32xbf16, #tpu.memory_space<vmem>>, vector<32x32xbf16>
      %cst = arith.constant dense<0.000000e+00> : vector<8x32xf32>
      %19 = tpu.matmul %17, %18, %cst {dimension_numbers = #tpu.dot_dimension_numbers<[1], [0], [0], [1], [0, 0, 1, 1], [], []>} : vector<8x32xbf16>, vector<32x32xbf16>, vector<8x32xf32> -> vector<8x32xf32>
      %c0_10 = arith.constant 0 : index
      %c0_11 = arith.constant 0 : index
      %c0_12 = arith.constant 0 : index
      %20 = vector.load %arg3[%c0_10, %c0_11, %c0_12] : memref<1x8x32xf32, #tpu.memory_space<vmem>>, vector<1x8x32xf32>
      %21 = vector.shape_cast %20 : vector<1x8x32xf32> to vector<8x32xf32>
      %22 = arith.addf %21, %19 : vector<8x32xf32>
      %cst_13 = arith.constant dense<0.000000e+00> : vector<8xf32>
      %23 = vector.multi_reduction <add>, %22, %cst_13 [1] : vector<8x32xf32> to vector<8xf32>
      %24 = vector.shape_cast %23 : vector<8xf32> to vector<8x1xf32>
      %25 = arith.mulf %22, %22 : vector<8x32xf32>
      %cst_14 = arith.constant dense<0.000000e+00> : vector<8xf32>
      %26 = vector.multi_reduction <add>, %25, %cst_14 [1] : vector<8x32xf32> to vector<8xf32>
      %27 = vector.shape_cast %26 : vector<8xf32> to vector<8x1xf32>
      %cst_15 = arith.constant 3.125000e-02 : f32
      %28 = vector.broadcast %cst_15 : f32 to vector<8x1xf32>
      %29 = arith.mulf %24, %28 : vector<8x1xf32>
      %cst_16 = arith.constant 3.125000e-02 : f32
      %30 = vector.broadcast %cst_16 : f32 to vector<8x1xf32>
      %31 = arith.mulf %27, %30 : vector<8x1xf32>
      %32 = arith.mulf %29, %29 : vector<8x1xf32>
      %33 = arith.subf %31, %32 : vector<8x1xf32>
      %34 = vector.broadcast %29 : vector<8x1xf32> to vector<8x32xf32>
      %35 = arith.subf %22, %34 : vector<8x32xf32>
      %cst_17 = arith.constant 9.99999974E-6 : f32
      %36 = vector.broadcast %cst_17 : f32 to vector<8x1xf32>
      %37 = arith.addf %33, %36 : vector<8x1xf32>
      %38 = math.rsqrt %37 : vector<8x1xf32>
      %39 = vector.broadcast %38 : vector<8x1xf32> to vector<8x32xf32>
      %40 = arith.mulf %35, %39 : vector<8x32xf32>
      %c0_18 = arith.constant 0 : index
      %c0_19 = arith.constant 0 : index
      %41 = vector.load %arg11[%c0_18, %c0_19] : memref<1x32xf32, #tpu.memory_space<vmem>>, vector<1x32xf32>
      %42 = vector.broadcast %41 : vector<1x32xf32> to vector<8x32xf32>
      %43 = arith.mulf %40, %42 : vector<8x32xf32>
      %c0_20 = arith.constant 0 : index
      %c0_21 = arith.constant 0 : index
      %44 = vector.load %arg12[%c0_20, %c0_21] : memref<1x32xf32, #tpu.memory_space<vmem>>, vector<1x32xf32>
      %45 = vector.broadcast %44 : vector<1x32xf32> to vector<8x32xf32>
      %46 = arith.addf %43, %45 : vector<8x32xf32>
      %47 = arith.truncf %46 : vector<8x32xf32> to vector<8x32xbf16>
      %c0_22 = arith.constant 0 : index
      %c0_23 = arith.constant 0 : index
      %48 = vector.load %arg9[%c0_22, %c0_23] : memref<32x64xbf16, #tpu.memory_space<vmem>>, vector<32x64xbf16>
      %cst_24 = arith.constant dense<0.000000e+00> : vector<8x64xf32>
      %49 = tpu.matmul %47, %48, %cst_24 {dimension_numbers = #tpu.dot_dimension_numbers<[1], [0], [0], [1], [0, 0, 1, 1], [], []>} : vector<8x32xbf16>, vector<32x64xbf16>, vector<8x64xf32> -> vector<8x64xf32>
      %50 = arith.mulf %49, %49 : vector<8x64xf32>
      %51 = arith.mulf %49, %50 : vector<8x64xf32>
      %cst_25 = arith.constant 4.471500e-02 : f32
      %52 = vector.broadcast %cst_25 : f32 to vector<8x64xf32>
      %53 = arith.mulf %52, %51 : vector<8x64xf32>
      %54 = arith.addf %49, %53 : vector<8x64xf32>
      %cst_26 = arith.constant 0.797884583 : f32
      %55 = vector.broadcast %cst_26 : f32 to vector<8x64xf32>
      %56 = arith.mulf %55, %54 : vector<8x64xf32>
      %57 = math.tanh %56 : vector<8x64xf32>
      %cst_27 = arith.constant 1.000000e+00 : f32
      %58 = vector.broadcast %cst_27 : f32 to vector<8x64xf32>
      %59 = arith.addf %58, %57 : vector<8x64xf32>
      %cst_28 = arith.constant 5.000000e-01 : f32
      %60 = vector.broadcast %cst_28 : f32 to vector<8x64xf32>
      %61 = arith.mulf %60, %59 : vector<8x64xf32>
      %62 = arith.mulf %49, %61 : vector<8x64xf32>
      %63 = arith.truncf %62 : vector<8x64xf32> to vector<8x64xbf16>
      %c0_29 = arith.constant 0 : index
      %c0_30 = arith.constant 0 : index
      %64 = vector.load %arg10[%c0_29, %c0_30] : memref<64x32xbf16, #tpu.memory_space<vmem>>, vector<64x32xbf16>
      %cst_31 = arith.constant dense<0.000000e+00> : vector<8x32xf32>
      %65 = tpu.matmul %63, %64, %cst_31 {dimension_numbers = #tpu.dot_dimension_numbers<[1], [0], [0], [1], [0, 0, 1, 1], [], []>} : vector<8x64xbf16>, vector<64x32xbf16>, vector<8x32xf32> -> vector<8x32xf32>
      %66 = arith.addf %22, %65 : vector<8x32xf32>
      %c0_32 = arith.constant 0 : index
      %c0_33 = arith.constant 0 : index
      %c0_34 = arith.constant 0 : index
      %67 = vector.load %arg13[%c0_32, %c0_33, %c0_34] : memref<1x8x32xf32, #tpu.memory_space<vmem>>, vector<1x8x32xf32>
      %68 = vector.shape_cast %67 : vector<1x8x32xf32> to vector<8x32xf32>
      %69 = vector.shape_cast %66 : vector<8x32xf32> to vector<1x8x32xf32>
      tpu.vector_store %arg13[%c0_32, %c0_33, %c0_34], %69 {strides = array<i32>} : memref<1x8x32xf32, #tpu.memory_space<vmem>>, vector<1x8x32xf32>,
    } else {
    }
    return
  }
  func.func @transform_0(%arg0: i32, %arg1: i32, %arg2: i32) -> (i32, i32, i32) {
    %c0_i32 = arith.constant 0 : i32
    %c0_i32_0 = arith.constant 0 : i32
    return %arg0, %arg1, %c0_i32 : i32, i32, i32
  }
  func.func @transform_1(%arg0: i32, %arg1: i32, %arg2: i32) -> (i32, i32, i32) {
    %c0_i32 = arith.constant 0 : i32
    %c0_i32_0 = arith.constant 0 : i32
    return %arg0, %arg1, %c0_i32 : i32, i32, i32
  }
  func.func @transform_2(%arg0: i32, %arg1: i32, %arg2: i32) -> (i32, i32, i32) {
    %c0_i32 = arith.constant 0 : i32
    %c0_i32_0 = arith.constant 0 : i32
    return %arg0, %arg2, %c0_i32 : i32, i32, i32
  }
  func.func @transform_3(%arg0: i32, %arg1: i32, %arg2: i32) -> (i32, i32, i32) {
    %c0_i32 = arith.constant 0 : i32
    %c0_i32_0 = arith.constant 0 : i32
    return %arg0, %arg2, %c0_i32 : i32, i32, i32
  }
  func.func @transform_4(%arg0: i32, %arg1: i32, %arg2: i32) -> (i32, i32, i32) {
    %c0_i32 = arith.constant 0 : i32
    %c0_i32_0 = arith.constant 0 : i32
    return %arg0, %c0_i32, %arg2 : i32, i32, i32
  }
  func.func @transform_5(%arg0: i32, %arg1: i32, %arg2: i32) -> (i32, i32) {
    %c0_i32 = arith.constant 0 : i32
    %c0_i32_0 = arith.constant 0 : i32
    %c0_i32_1 = arith.constant 0 : i32
    return %c0_i32, %c0_i32_0 : i32, i32
  }
  func.func @transform_6(%arg0: i32, %arg1: i32, %arg2: i32) -> (i32, i32) {
    %c0_i32 = arith.constant 0 : i32
    %c0_i32_0 = arith.constant 0 : i32
    %c0_i32_1 = arith.constant 0 : i32
    return %c0_i32, %c0_i32_0 : i32, i32
  }
  func.func @transform_7(%arg0: i32, %arg1: i32, %arg2: i32) -> (i32, i32) {
    %c0_i32 = arith.constant 0 : i32
    %c0_i32_0 = arith.constant 0 : i32
    %c0_i32_1 = arith.constant 0 : i32
    return %c0_i32, %c0_i32_0 : i32, i32
  }
  func.func @transform_8(%arg0: i32, %arg1: i32, %arg2: i32) -> (i32, i32) {
    %c0_i32 = arith.constant 0 : i32
    %c0_i32_0 = arith.constant 0 : i32
    %c0_i32_1 = arith.constant 0 : i32
    return %c0_i32, %c0_i32_0 : i32, i32
  }
  func.func @transform_9(%arg0: i32, %arg1: i32, %arg2: i32) -> (i32, i32) {
    %c0_i32 = arith.constant 0 : i32
    %c0_i32_0 = arith.constant 0 : i32
    %c0_i32_1 = arith.constant 0 : i32
    return %c0_i32, %c0_i32_0 : i32, i32
  }
  func.func @transform_10(%arg0: i32, %arg1: i32, %arg2: i32) -> (i32, i32, i32) {
    %c0_i32 = arith.constant 0 : i32
    %c0_i32_0 = arith.constant 0 : i32
    return %arg0, %arg1, %c0_i32 : i32, i32, i32
  }
}

</mosaic_0001>

<bundles_post_ra>
// kernel: block_forward.2
= control target key start
LH: loop header
LB: loop body
LE: loop exit
PB: predicated region body
PF: predicated region fallthrough
CT: control target
= control target key end

     0   :  { %12 = vsyncpa [#allocation3], 0  ;;  %s354_s0 = inlined_call_operand.hbm [shape: f32[16,32], index: 0, kind: input, shape index: {}]   ;;  %s355_s1 = inlined_call_operand.vmem [shape: f32[1,32], index: 1, kind: input, shape index: {}]   ;;  %s356_s2 = inlined_call_operand.vmem [shape: f32[1,32], index: 2, kind: input, shape index: {}]   ;;  %s357_s3 = inlined_call_operand.hbm [shape: bf16[32,96], index: 3, kind: input, shape index: {}]   ;;  %s358_s4 = inlined_call_operand.vmem [shape: bf16[16,32], index: 4, kind: output, shape index: {0}]   ;;  %s359_s5 = inlined_call_operand.vmem [shape: bf16[16,32], index: 5, kind: output, shape index: {1}]   ;;  %s360_s6 = inlined_call_operand.vmem [shape: bf16[16,32], index: 6, kind: output, shape index: {2}]  }
   0x1   :  { %s18_s23 = sshll.u32 %s354_s0, 4  ;;  %s19_s23 = int_to_ptr.hbm [resolvable:$true] %s18_s23 }
   0x2   :  { %13 = vsyncpa [#allocation5], 0  ;;  %s267_s24 = smov [#allocation2]   ;;  %s35_s28 = sshll.u32 %s357_s3, 4  ;;  %s36_s28 = int_to_ptr.hbm [resolvable:$true] %s35_s28 }
   0x3   :  { %s20_s25 = sshll.u32 %s267_s24, 4  ;;  %s268_s29 = smov 128   ;;  %s21_s25 = int_to_ptr.vmem [resolvable:$true] %s20_s25 }
   0x4   :  { %s269_s30 = smov 8   ;;  %s270_s7 = smov [#allocation4]  }
   0x5   :  { %26 = dma.hbm_to_vmem [thread:$0]  %s19_s23, 256, %s21_s25, [#allocation3], %s268_s29, %s268_s29, %s269_s30  }
   0x6   :  { %s37_s8 = sshll.u32 %s270_s7, 4  ;;  %s271_s9 = smov 64   ;;  %s38_s8 = int_to_ptr.vmem [resolvable:$true] %s37_s8 }
   0x7   :  { %s272_s10 = smov 4  }
   0x8   :  { %43 = dma.hbm_to_vmem [thread:$0]  %s36_s28, 256, %s38_s8, [#allocation5], %s271_s9, %s271_s9, %s272_s10  }
   0x9   :  { %263 = dma.done.wait [#allocation3], 256  }
   0xa   :  { %264 = vsyncadd [#allocation3], 4294967040 }
   0xb   :  { %265 = dma.done.wait [#allocation5], 256  }
   0xc   :  { %266 = vsyncadd [#allocation5], 4294967040  ;;  %vm55_vm0 = vcmask 261120   ;;  %v53_v0 = vld [vmem:[#allocation2] sm:$0xff]  ;;  %v54_v3 = vld [vmem:[#allocation2 + $0x8] sm:$0xff]  ;;  %vm154_vm7 = vcmask 257024  }
   0xd   :  { %v56_v1 = vsel %vm55_vm0, %v53_v0, 0.0  ;;  %v62_v2 = vmul.f32 %v53_v0, %v53_v0  ;;  %v63_v5 = vmul.f32 %v54_v3, %v54_v3  ;;  %v59_v6 = vsel %vm55_vm0, %v54_v3, 0.0  ;;  %v201_v11 = vld [vmem:[#allocation4 + $0x8] sm:$0xff]  ;;  %v200_v14 = vld [vmem:[#allocation4] sm:$0xff]  ;;  %v209_v38 = vld [vmem:[%s355_s1] ss:$0 sm:$0xff] }
   0xe   :  { %57 = vadd.xlane.f32.xlu0 %v56_v1  ;;  %142 = vmatpush.bf16.msra.mxu0 %v201_v11  ;;  %v210_v44 = vld [vmem:[%s356_s2] ss:$0 sm:$0xff]  ;;  %s273_s1 = smov 96  }
   0xf   :  { %v64_v4 = vsel %vm55_vm0, %v62_v2, 0.0  ;;  %v67_v7 = vsel %vm55_vm0, %v63_v5, 0.0 }
  0x10   :  { %65 = vadd.xlane.f32.xlu1 %v64_v4 }
  0x12   :  { %143 = vmatpush.bf16.msra.mxu0 %v200_v14 }
  0x16   :  { %60 = vadd.xlane.f32.xlu0 %v59_v6 }
  0x18   :  { %68 = vadd.xlane.f32.xlu1 %v67_v7 }
  0x81   :  { %v58_v8 = vpop.xlane.xlu0 %57 }
  0x82   :  { %v70_v9 = vmul.f32 0.03125, %v58_v8 }
  0x83   :  { %v66_v10 = vpop.xlane.xlu1 %65 }
  0x84   :  { %v74_v12 = vmul.f32 %v70_v9, %v70_v9  ;;  %v72_v13 = vmul.f32 0.03125, %v66_v10  ;;  %v78_v35 = vsub.f32 %v53_v0, %v70_v9 }
  0x86   :  { %v76_v15 = vsub.f32 %v72_v13, %v74_v12 }
  0x88   :  { %v80_v16 = vadd.f32 1e-05, %v76_v15 }
  0x89   :  { %v61_v17 = vpop.xlane.xlu0 %60 }
  0x8a   :  { %211 = vrsqrt.f32 %v80_v16  ;;  %v71_v18 = vmul.f32 0.03125, %v61_v17  ;;  %vm88_vm2 = vweird.f32 %v80_v16 }
  0x8b   :  { %v69_v19 = vpop.xlane.xlu1 %68 }
  0x8c   :  { %v75_v20 = vmul.f32 %v71_v18, %v71_v18  ;;  %v73_v21 = vmul.f32 0.03125, %v69_v19  ;;  %v79_v40 = vsub.f32 %v54_v3, %v71_v18 }
  0x8e   :  { %v77_v22 = vsub.f32 %v73_v21, %v75_v20 }
  0x90   :  { %v212_v23 = vpop.eup %211  ;;  %v81_v24 = vadd.f32 1e-05, %v77_v22 }
  0x91   :  { %v83_v25 = vmul.f32 %v212_v23, %v80_v16  ;;  %vm89_vm1 = vweird.f32 %v212_v23 }
  0x92   :  { %213 = vrsqrt.f32 %v81_v24  ;;  %vm90_vm3 = vmor %vm88_vm2, %vm89_vm1  ;;  %vm98_vm5 = vweird.f32 %v81_v24 }
  0x93   :  { %v84_v26 = vmul.f32 %v212_v23, %v83_v25 }
  0x95   :  { %v85_v27 = vmul.f32 0.5, %v84_v26 }
  0x97   :  { %v86_v28 = vsub.f32 1.5, %v85_v27 }
  0x98   :  { %v214_v29 = vpop.eup %213 }
  0x99   :  { %v87_v30 = vmul.f32 %v212_v23, %v86_v28  ;;  %v93_v31 = vmul.f32 %v214_v29, %v81_v24  ;;  %vm99_vm4 = vweird.f32 %v214_v29 }
  0x9a   :  { %vm100_vm6 = vmor %vm98_vm5, %vm99_vm4 }
  0x9b   :  { %v94_v32 = vmul.f32 %v214_v29, %v93_v31  ;;  %v91_v33 = vsel %vm90_vm3, %v212_v23, %v87_v30 }
  0x9c   :  { %v102_v37 = vmul.f32 %v91_v33, %v78_v35 }
  0x9d   :  { %v95_v34 = vmul.f32 0.5, %v94_v32 }
  0x9e   :  { %v108_v43 = vmul.f32 %v209_v38, %v102_v37 }
  0x9f   :  { %v96_v36 = vsub.f32 1.5, %v95_v34 }
  0xa0   :  { %v114_v46 = vadd.f32 %v210_v44, %v108_v43 }
  0xa1   :  { %v97_v39 = vmul.f32 %v214_v29, %v96_v36 }
  0xa3   :  { %v101_v41 = vsel %vm100_vm6, %v214_v29, %v97_v39 }
  0xa4   :  { %v103_v42 = vmul.f32 %v101_v41, %v79_v40 }
  0xa6   :  { %v109_v45 = vmul.f32 %v209_v38, %v103_v42 }
  0xa8   :  { %v115_v47 = vadd.f32 %v210_v44, %v109_v45 }
  0xaa   :  { %v116_v48 = vpack.c.bf16 %v115_v47, %v114_v46 }
  0xac   :  { %199 = vmatmul.msk.bf16.vlgmr.msra.gmra.mxu0 %vm55_vm0, %v116_v48 }
 0x129   :  { %v145_v49 = vpop.f32.mrf.mxu0 }
 0x12a   :  { %v150_v50 = vmul.f32 0.17677669, %v145_v49  ;;  %v157_v51 = vpack.c.bf16 %v145_v49, %v145_v49 }
 0x12c   :  { %v152_v52 = vpack.c.bf16 %v150_v50, %v150_v50  ;;  %169 = vrot.lane.b32.xlu0 %v157_v51, %s271_s9  ;;  %161 = vrot.lane.b32.xlu2 %v157_v51, %s273_s1 }
 0x12e   :  { %155 = vst.msk [vmem:[%s358_s4] sm:$0xf] %vm154_vm7, %v152_v52 }
 0x131   :  { %v147_v53 = vpop.f32.mrf.mxu0 }
 0x132   :  { %v151_v54 = vmul.f32 0.17677669, %v147_v53  ;;  %v158_v55 = vpack.c.bf16 %v147_v53, %v147_v53 }
 0x134   :  { %v153_v56 = vpack.c.bf16 %v151_v54, %v151_v54  ;;  %171 = vrot.lane.b32.xlu1 %v158_v55, %s271_s9  ;;  %163 = vrot.lane.b32.xlu2 %v158_v55, %s273_s1 }
 0x136   :  { %156 = vst.msk [vmem:[%s358_s4 + $0x4] sm:$0xf] %vm154_vm7, %v153_v56 }
 0x186   :  { %v162_v57 = vpop.permute.xlu2 %161 }
 0x187   :  { %167 = vst.msk [vmem:[%s359_s5] sm:$0xf] %vm154_vm7, %v162_v57 }
 0x18e   :  { %v164_v58 = vpop.permute.xlu2 %163 }
 0x18f   :  { %168 = vst.msk [vmem:[%s359_s5 + $0x4] sm:$0xf] %vm154_vm7, %v164_v58 }
 0x19e   :  { %v170_v59 = vpop.permute.xlu0 %169 }
 0x19f   :  { %175 = vst.msk [vmem:[%s360_s6] sm:$0xf] %vm154_vm7, %v170_v59 }
 0x1a6   :  { %v172_v60 = vpop.permute.xlu1 %171 }
 0x1a7   :  { %176 = vst.msk [vmem:[%s360_s6 + $0x4] sm:$0xf] %vm154_vm7, %v172_v60 }
 0x1a8   :  { %189 = vsyncpa [#allocation3], 1 }
 0x1a9   :  { %190 = vsyncpa [#allocation5], 1 }

// kernel: block_forward.3
= control target key start
LH: loop header
LB: loop body
LE: loop exit
PB: predicated region body
PF: predicated region fallthrough
CT: control target
= control target key end

     0   :  { %s1374_s0 = inlined_call_operand.vmem [shape: f32[2,8,32], index: 0, kind: input, shape index: {}]   ;;  %s1375_s1 = inlined_call_operand.vmem [shape: bf16[2,8,32], index: 1, kind: input, shape index: {}]   ;;  %s1376_s2 = inlined_call_operand.vmem [shape: bf16[2,8,32], index: 2, kind: input, shape index: {}]   ;;  %s1377_s3 = inlined_call_operand.vmem [shape: bf16[2,8,32], index: 3, kind: input, shape index: {}]   ;;  %s1378_s4 = inlined_call_operand.vmem [shape: f32[2,1,8], index: 4, kind: input, shape index: {}]   ;;  %s1379_s5 = inlined_call_operand.vmem [shape: bf16[32,32], index: 5, kind: input, shape index: {}]   ;;  %s1380_s6 = inlined_call_operand.vmem [shape: bf16[32,64], index: 6, kind: input, shape index: {}]   ;;  %s1381_s7 = inlined_call_operand.vmem [shape: bf16[64,32], index: 7, kind: input, shape index: {}]   ;;  %s1382_s8 = inlined_call_operand.vmem [shape: f32[1,32], index: 8, kind: input, shape index: {}]   ;;  %s1383_s9 = inlined_call_operand.vmem [shape: f32[1,32], index: 9, kind: input, shape index: {}]   ;;  %s1384_s10 = inlined_call_operand.hbm [shape: f32[2,8,32], index: 10, kind: output, shape index: {}]  }
   0x1   :  { %1385 = sst [smem:[#allocation8_spill]] %s1374_s0 }
   0x2   :  { %15 = vsyncpa [#allocation6], 0 }
   0x3   :  { %17 = vsyncpa [#allocation6 + $0x1], 0  ;;  %s1202_s13 = smov 0   ;;  %s1204_s14 = smov 0  }
   0x4   :  { %s1206_s15 = smov 0   ;;  %s1208_s16 = smov 0  }
   0x5   :  { %s1210_s17 = smov 0   ;;  %s1212_s18 = smov 0  }
   0x6 LB: > { %s932_s19 = sadd.s32 4294967295, %s1142_s18   ;;  %s933_s20 = sadd.s32 4294967294, %s1142_s18   ;;  %s1142_s18 = sphi %s1212_s18, %s23_s18   ;;  %s1138_s17 = sphi %s1210_s17, %s1393_s17   ;;  %s1134_s16 = sphi %s1208_s16, %s1392_s16   ;;  %s1130_s15 = sphi %s1206_s15, %s1391_s15   ;;  %s1126_s14 = sphi %s1204_s14, %s1390_s14   ;;  %s1122_s13 = sphi %s1202_s13, %s1389_s13  }
   0x7   : > { %s42_s21 = sadd.s32 1, %s1138_s17  ;;  %s296_s22 = sadd.s32 1, %s1130_s15 }
   0x8   : > { %p44_p0 = scmp.ge.s32.totalorder %s42_s21, 2  ;;  %p306_p1 = scmp.ne.s32.totalorder %s1130_s15, %s1126_s14 }
   0x9   : > { %p307_p2 = scmp.eq.s32.totalorder %s932_s19, 1  ;;  %p312_p3 = scmp.ne.s32.totalorder %s1126_s14, %s1122_s13 }
   0xa   : > { %s1395_s21 = smov (%p44_p0, %s42_s21), 0  ;;  %p313_p5 = scmp.eq.s32.totalorder %s933_s20, 1 }
   0xb   : > { %p1242_p4 = por %p307_p2, %p306_p1  ;;  %s291_s24 = ssub.s32 %s1138_s17, %s1395_s21 }
   0xc   : > { %p936_p6 = scmp.ge.s32.totalorder %s1142_s18, 1  ;;  %p294_p7 = scmp.eq.s32.totalorder %s291_s24, 0 }
   0xd   : > { %p1249_p8 = por %p313_p5, %p312_p3  ;;  %p395_p9 = scmp.lt.s32.totalorder %s1142_s18, 3 }
   0xe   : > { %s1255_s26 = scalar_select %p294_p7, %s1130_s15, %s296_s22  }
   0xf   : > { %p396_p10 = pnand %p936_p6, %p395_p9 }
  0x10   : > { %p462_p11 = scmp.lt.s32.totalorder (!%p396_p10), %s1134_s16, 1  ;;  %s1388_s0 = sld [smem:[#allocation8_spill]] (!%p396_p10) }
  0x11   : > { %399 = sbr.rel (%p396_p10) target bundleno = 1212 (0x4bc), region = 60 }
  0x16   : > { %s1259_s27 = scalar_select %p462_p11, %s1134_s16, 1  ;;  %vm504_vm0 = vcmask 261120   ;;  %v1144_v3 = vmov 0   ;;  %vm501_vm1 = vcmask 7168   ;;  %v1145_v4 = vmov -1e+30  }
  0x17   : > { %1049 = vset.pattern.permute.xlu0 %v1144_v3  ;;  %1050 = vset.pattern.permute.xlu1 %v1144_v3  ;;  %502 = vst.msk [vmem:[#allocation2] sm:$0xff] %vm501_vm1, %v1145_v4  ;;  %v535_v6 = vlaneseq  ;;  %vm552_vm6 = vcmask 64512   ;;  %v1146_v15 = vmov 0.0   ;;  %vm588_vm7 = vcmask 1043456   ;;  %v984_v31 = vld [vmem:[%s1379_s5 + $0x8] sm:$0xff]  ;;  %v983_v43 = vld [vmem:[%s1379_s5] sm:$0xff] }
  0x18   : > { %s1262_s28 = sshll.u32 %s1259_s27, 2  ;;  %1051 = vset.pattern.permute.xlu2 %v1144_v3  ;;  %s495_s29 = scalar_lea.vmem %s1378_s4, %s1259_s27  ;;  %503 = vst.msk [vmem:[#allocation3] sm:$0xff] %vm501_vm1, %v1146_v15  ;;  %647 = vmatpush.bf16.msra.mxu2 %v984_v31  ;;  %v986_v55 = vld [vmem:[%s1380_s6 + $0x8] sm:$0xff]  ;;  %v985_v56 = vld [vmem:[%s1380_s6] sm:$0xff]  ;;  %vm765_vm11 = vcmask 523264  }
  0x19   : > { %s482_s11 = scalar_lea.vmem %s1376_s2, %s1262_s28  ;;  %s475_s20 = scalar_lea.vmem %s1375_s1, %s1262_s28  ;;  %v544_v5 = vld [vmem:[%s495_s29] sm:$0x1]  ;;  %v536_v8 = vshrl.u32 %v535_v6, 7  ;;  %v540_v9 = vand.u32 127, %v535_v6  ;;  %505 = vst.msk [vmem:[#allocation4] sm:$0xff] %vm504_vm0, %v1146_v15  ;;  %716 = vmatpush.bf16.msra.mxu3 %v986_v55  ;;  %v989_v15 = vld [vmem:[%s1381_s7 + $0x10] sm:$0xff] }
  0x1a   : > { %v514_v0 = vld [vmem:[%s482_s11] sm:$0xf]  ;;  %vm545_vm2 = vcmp.gt.f32.partialorder %v544_v5, 0.0  ;;  %s489_s12 = scalar_lea.vmem %s1377_s3, %s1262_s28  ;;  %s938_s24 = sshll.u32 %s1259_s27, 3 }
  0x1b   : > { %v520_v1 = vsel %vm504_vm0, %v514_v0, 0  ;;  %v513_v2 = vld [vmem:[%s475_s20] sm:$0xf]  ;;  %v546_v7 = vsel %vm545_vm2, 1, %v1144_v3  ;;  %vm543_vm3 = vcmp.le.s32.totalorder %v540_v9, %v536_v8  ;;  %s468_s11 = scalar_lea.vmem %s1388_s0, %s938_s24  ;;  %s459_s24 = sand.u32 1, %s1126_s14  }
  0x1c   : > { %529 = vmatpush.bf16.xpose.msra.mxu0 %v520_v1  ;;  %v547_v10 = vperm.slane %v546_v7, 0  ;;  %v584_v20 = vld [vmem:[%s489_s12] sm:$0xf]  ;;  %648 = vmatpush.bf16.msra.mxu2 %v983_v43  ;;  %s980_s29 = sshll.u32 %s1134_s16, 3  ;;  %s937_s30 = sshll.u32 %s459_s24, 3 }
  0x1d   : > { %v590_v21 = vsel %vm588_vm7, %v584_v20, 0  ;;  %v654_v48 = vld [vmem:[%s468_s11] sm:$0xff]  ;;  %717 = vmatpush.bf16.msra.mxu3 %v985_v56  ;;  %s796_s12 = scalar_lea.hbm %s1384_s10, %s980_s29  ;;  %s461_s28 = scalar_lea.vmem [#allocation5], %s937_s30 }
  0x1e   : > { %vm548_vm4 = vcmp.eq.s32.totalorder %v547_v10, 1  ;;  %v551_v16 = vld [vmem:[#allocation2] sm:$0xff]  ;;  %599 = vmatpush.bf16.msra.mxu1 %v590_v21  ;;  %s798_s19 = sshll.u32 %s461_s28, 4  ;;  %s800_s20 = sshll.u32 %s796_s12, 4  ;;  %s799_s19 = int_to_ptr.vmem [resolvable:$true] %s798_s19  ;;  %s801_s20 = int_to_ptr.hbm [resolvable:$true] %s800_s20 }
  0x1f   : > { %vm549_vm5 = vmand %vm543_vm3, %vm548_vm4  ;;  %v568_v30 = vld [vmem:[#allocation3] sm:$0xff]  ;;  %v1052_v7 = vld [vmem:[%s1382_s8] ss:$0 sm:$0xff]  ;;  %s785_s22 = scalar_lea.sflag [#allocation6], %s459_s24  ;;  %s1078_s0 = sshra.s32 %s801_s20, 4  ;;  %s1079_s0 = int_to_ptr.hbm [resolvable:$true] %s1078_s0 }
  0x20   : > { %v576_v39 = vld [vmem:[#allocation4] sm:$0xff]  ;;  %v1053_v10 = vld [vmem:[%s1383_s9] ss:$0 sm:$0xff]  ;;  %s1080_s16 = scalar_lea.hbm %s1079_s0, 8  ;;  %s1084_s30 = scalar_lea.hbm %s1384_s10, 16 }
  0x21   : > { %p1081_p12 = scmp.ne.s32.totalorder %s1079_s0, %s1080_s16  ;;  %p1085_p1 = scmp.lt.s32.totalorder %s1079_s0, %s1384_s10 }
  0x22   : > { %p1086_p2 = scmp.lt.s32.totalorder %s1084_s30, %s1080_s16 }
  0x23   : > { %942 = vmatmul.msk.bf16.vlgmr.msra.gmra.mxu0 %vm504_vm0, %v513_v2  ;;  %p1082_p13 = pnand %p1081_p12, %p1242_p4 }
  0x24   : > { %p1087_p3 = por %p1086_p2, %p1085_p1 }
  0x25   : > { %p1083_p0 = pneg %p1082_p13 }
  0x27   : > { %p1088_p5 = pnand %p1087_p3, %p1083_p0 }
  0xa0   : > { %v531_v11 = vpop.f32.mrf.mxu0 }
  0xa1   : > { %v550_v12 = vsel %vm549_vm5, %v531_v11, -1e+09 }
  0xa2   : > { %v553_v13 = vsel %vm552_vm6, %v550_v12, -inf }
  0xa3   : > { %554 = vmax.xlane.f32.xlu0 %v553_v13 }
  0xa8   : > { %v533_v14 = vpop.f32.mrf.mxu0 }
  0xa9   : > { %v990_v14 = vld [vmem:[%s1381_s7 + $0x18] sm:$0xff] }
  0xaa   : > { %773 = vmatpush.bf16.msrb.mxu1 %v990_v14 }
  0xae   : > { %774 = vmatpush.bf16.msrb.mxu1 %v989_v15 }
 0x116   : > { %v555_v17 = vpop.xlane.xlu0 %554 }
 0x117   : > { %v556_v18 = vmax.f32 %v551_v16, %v555_v17  ;;  %v987_v17 = vld [vmem:[%s1381_s7] sm:$0xff] }
 0x119   : > { %v557_v19 = vsub.f32 %v551_v16, %v556_v18  ;;  %607 = vst.msk [vmem:[#allocation2] sm:$0xff] %vm501_vm1, %v556_v18  ;;  %562 = vperm.xlu0 %1049, %v556_v18   ;;  %v988_v16 = vld [vmem:[%s1381_s7 + $0x8] sm:$0xff] }
 0x11a   : > { %775 = vmatpush.bf16.msrb.mxu1 %v988_v16 }
 0x11b   : > { %v558_v28 = vmul.f32 1.442695, %v557_v19 }
 0x11e   : > { %776 = vmatpush.bf16.msrb.mxu1 %v987_v17 }
 0x18b   : > { %v563_v22 = vpop.permute.xlu0 %562 }
 0x18c   : > { %v565_v23 = vsub.f32 %v550_v12, %v563_v22 }
 0x18e   : > { %v566_v24 = vmul.f32 1.442695, %v565_v23 }
 0x190   : > { %1054 = vpow2.f32 %v566_v24 }
 0x191   : > { %1056 = vpow2.f32 %v558_v28 }
 0x196   : > { %v1055_v25 = vpop.eup %1054 }
 0x197   : > { %v570_v26 = vsel %vm552_vm6, %v1055_v25, 0.0  ;;  %v583_v27 = vpack.c.bf16 %v1055_v25, %v1055_v25  ;;  %v1057_v29 = vpop.eup %1056 }
 0x198   : > { %571 = vadd.xlane.f32.xlu1 %v570_v26  ;;  %v569_v32 = vmul.f32 %v1057_v29, %v568_v30 }
 0x199   : > { %943 = vmatmul.msk.bf16.vlgmr.msra.gmra.mxu1 %vm552_vm6, %v583_v27 }
 0x1b1   : > { %579 = vperm.xlu1 %1050, %v1057_v29  }
 0x20b   : > { %v572_v33 = vpop.xlane.xlu1 %571 }
 0x20c   : > { %v573_v34 = vadd.f32 %v572_v33, %v569_v32 }
 0x20e   : > { %575 = vst.msk [vmem:[#allocation3] sm:$0xff] %vm501_vm1, %v573_v34 }
 0x215   : > { %v611_v35 = vld [vmem:[#allocation3] sm:$0xff] }
 0x216   : > { %v601_v36 = vpop.f32.mrf.mxu1  ;;  %1058 = vrcp.f32 %v611_v35 }
 0x21c   : > { %v1059_v37 = vpop.eup %1058 }
 0x21d   : > { %616 = vperm.xlu2 %1051, %v1059_v37  }
 0x21e   : > { %v603_v38 = vpop.f32.mrf.mxu1 }
 0x223   : > { %v580_v40 = vpop.permute.xlu1 %579 }
 0x224   : > { %v582_v41 = vmul.f32 %v580_v40, %v576_v39 }
 0x226   : > { %v605_v42 = vadd.f32 %v601_v36, %v582_v41 }
 0x228   : > { %606 = vst.msk [vmem:[#allocation4] sm:$0xff] %vm504_vm0, %v605_v42 }
 0x22f   : > { %v613_v44 = vld [vmem:[#allocation4] sm:$0xff] }
 0x277   : > { %v617_v45 = vpop.permute.xlu2 %616 }
 0x278   : > { %v619_v46 = vmul.f32 %v617_v45, %v613_v44 }
 0x27a   : > { %v620_v47 = vpack.c.bf16 %v619_v46, %v619_v46 }
 0x27c   : > { %952 = vmatmul.msk.bf16.vlgmr.msra.gmra.mxu2 %vm504_vm0, %v620_v47 }
 0x2ff   : > { %v650_v49 = vpop.f32.mrf.mxu2 }
 0x300   : > { %v1302_v50 = vadd.f32 %v654_v48, %v650_v49 }
 0x302   : > { %v656_v51 = vsel %vm504_vm0, %v1302_v50, 0.0  ;;  %v659_v52 = vmul.f32 %v1302_v50, %v1302_v50 }
 0x303   : > { %657 = vadd.xlane.f32.xlu2 %v656_v51 }
 0x304   : > { %v660_v53 = vsel %vm504_vm0, %v659_v52, 0.0 }
 0x305   : > { %661 = vadd.xlane.f32.xlu1 %v660_v53 }
 0x307   : > { %v652_v54 = vpop.f32.mrf.mxu2 }
 0x376   : > { %v658_v57 = vpop.xlane.xlu2 %657 }
 0x377   : > { %v663_v58 = vmul.f32 0.03125, %v658_v57 }
 0x378   : > { %v662_v59 = vpop.xlane.xlu1 %661 }
 0x379   : > { %v665_v60 = vmul.f32 %v663_v58, %v663_v58  ;;  %v664_v61 = vmul.f32 0.03125, %v662_v59  ;;  %v667_v6 = vsub.f32 %v1302_v50, %v663_v58 }
 0x37b   : > { %v666_v62 = vsub.f32 %v664_v61, %v665_v60 }
 0x37d   : > { %v668_v63 = vadd.f32 1e-05, %v666_v62 }
 0x37f   : > { %1060 = vrsqrt.f32 %v668_v63  ;;  %vm675_vm9 = vweird.f32 %v668_v63 }
 0x385   : > { %v1061_v0 = vpop.eup %1060 }
 0x386   : > { %v670_v1 = vmul.f32 %v1061_v0, %v668_v63  ;;  %vm676_vm8 = vweird.f32 %v1061_v0 }
 0x387   : > { %vm677_vm10 = vmor %vm675_vm9, %vm676_vm8 }
 0x388   : > { %v671_v2 = vmul.f32 %v1061_v0, %v670_v1 }
 0x38a   : > { %v672_v3 = vmul.f32 0.5, %v671_v2 }
 0x38c   : > { %v673_v4 = vsub.f32 1.5, %v672_v3 }
 0x38e   : > { %v674_v5 = vmul.f32 %v1061_v0, %v673_v4 }
 0x390   : > { %v678_v8 = vsel %vm677_vm10, %v1061_v0, %v674_v5 }
 0x391   : > { %v679_v9 = vmul.f32 %v678_v8, %v667_v6 }
 0x393   : > { %v684_v11 = vmul.f32 %v1052_v7, %v679_v9 }
 0x395   : > { %v689_v12 = vadd.f32 %v1053_v10, %v684_v11 }
 0x397   : > { %v690_v13 = vpack.c.bf16 %v689_v12, %v689_v12 }
 0x399   : > { %961 = vmatmul.msk.bf16.vlgmr.msra.gmra.mxu3 %vm504_vm0, %v690_v13 }
 0x41c   : > { %v719_v18 = vpop.f32.mrf.mxu3 }
 0x41d   : > { %v723_v19 = vmul.f32 %v719_v18, %v719_v18 }
 0x41f   : > { %v724_v20 = vmul.f32 %v723_v19, %v719_v18 }
 0x421   : > { %v725_v21 = vmul.f32 0.044715, %v724_v20 }
 0x423   : > { %v726_v22 = vadd.f32 %v725_v21, %v719_v18 }
 0x424   : > { %v721_v23 = vpop.f32.mrf.mxu3 }
 0x425   : > { %v727_v24 = vmul.f32 0.7978846, %v726_v22 }
 0x427   : > { %1062 = vtanh.f32 %v727_v24 }
 0x42d   : > { %v1063_v25 = vpop.eup %1062 }
 0x42e   : > { %v729_v26 = vadd.f32 1.0, %v1063_v25 }
 0x430   : > { %v730_v27 = vmul.f32 0.5, %v729_v26 }
 0x432   : > { %v731_v28 = vmul.f32 %v730_v27, %v719_v18 }
 0x434   : > { %v732_v29 = vpack.c.bf16 %v731_v28, %v731_v28 }
 0x436   : > { %978 = vmatmul.msk.bf16.vlgmr.msrb.gmra.mxu1 %vm765_vm11, %v732_v29 }
 0x4b3   : > { %v778_v30 = vpop.f32.mrf.mxu1 }
 0x4b4   : > { %v782_v31 = vadd.f32 %v778_v30, %v1302_v50 }
 0x4b6   : > { %783 = vst.msk [vmem:[%s461_s28] sm:$0xff] %vm504_vm0, %v782_v31 }
 0x4b7   : > { %1091 = shalt.err (!%p1088_p5)
}
 0x4b8   : > { %991 = dma.vmem_to_hbm [thread:$0]  (%p1242_p4), %s799_s19, 128, %s801_s20, %s785_s22  }
 0x4bb   : > { %v780_v32 = vpop.f32.mrf.mxu1 }
 0x4bc PF: > { %p997_p6 = scmp.ge.s32.totalorder %s1142_s18, 2  ;;  %s812_s24 = sand.u32 1, %s1122_s13  }
 0x4bd   : > { %s813_s28 = scalar_lea.sflag [#allocation6], %s812_s24 }
 0x4be   : > { %p994_p7 = pnand %p997_p6, %p1249_p8 }
 0x4c0   : > { %p995_p9 = pneg %p994_p7 }
 0x4c2   : > { %1117 = dma.done.wait (%p995_p9), %s813_s28, 128  }
 0x4c3   : > { %1119 = vsyncadd (%p995_p9), %s813_s28, 4294967168  ;;  %s23_s18 = sadd.s32 1, %s1142_s18   ;;  %s1389_s13 = smov %s1126_s14 }
 0x4c4   : > { %p20_p10 = scmp.ge.s32.totalorder %s23_s18, 4   ;;  %s1390_s14 = smov %s1130_s15 }
 0x4c5   : > { %s1391_s15 = smov %s1255_s26  ;;  %s1392_s16 = smov %s1138_s17 }
 0x4c6   : > { %s1393_s17 = smov %s1395_s21  ;;  %22 = sbr.rel (!%p20_p10) target bundleno = 6 (0x6), region = 119 }
 0x4cb   :  { %819 = vsyncpa [#allocation6], 1 }
 0x4cc   :  { %821 = vsyncpa [#allocation6 + $0x1], 1 }

</bundles_post_ra>
